<compile_context>
chip_gen: v6e
topology: v6e:2x2x1
jax: 0.10.0
libtpu: 0.0.40
codegen_flags: <defaults>
</compile_context>

<pallas_src>
import functools

import jax
import jax.numpy as jnp
from jax.experimental import pallas as pl
from jax.experimental.pallas import tpu as pltpu

_LANES = 128        # vreg lane width
_SUBLANES = 8       # vreg sublane count
_BLOCK_ROWS = 4096  # rows of 128 lanes per grid step (2 MiB f32 per input block)


def _sse_partial_kernel(a_ref, b_ref, out_ref, *, block_rows, total_rows):
    """Per-block partial sum of (a-b)^2, folded into an (8, 128) vreg tile."""
    d = a_ref[...].astype(jnp.float32) - b_ref[...].astype(jnp.float32)
    sq = d * d
    if total_rows % block_rows != 0:
        # Only emitted when a partial last block exists: zero out-of-bounds rows.
        row = (pl.program_id(0) * block_rows
               + jax.lax.broadcasted_iota(jnp.int32, sq.shape, 0))
        sq = jnp.where(row < total_rows, sq, 0.0)
    # Pure-VPU reduction: fold groups of 8 sublanes on top of each other
    # (no cross-lane XLU work, no serial scalar accumulator).
    partial = sq.reshape(block_rows // _SUBLANES, _SUBLANES, _LANES).sum(axis=0)
    out_ref[...] = partial.reshape(1, _SUBLANES, _LANES)


def _mse_pallas(a, b, *, block_rows=_BLOCK_ROWS):
    """mean((a - b)**2) via a Pallas partial-sum reduction kernel."""
    assert a.shape == b.shape, (a.shape, b.shape)
    n = a.size

    a_flat = a.reshape(-1)   # native dtype; cast happens per-tile in VMEM
    b_flat = b.reshape(-1)

    chunk = _SUBLANES * _LANES          # 1024 elements
    n_bulk = (n // chunk) * chunk

    tail_sse = jnp.float32(0.0)
    if n_bulk < n:
        # Ragged tail (<1024 elements): negligible, compute in plain JAX.
        dt = (a_flat[n_bulk:].astype(jnp.float32)
              - b_flat[n_bulk:].astype(jnp.float32))
        tail_sse = jnp.sum(dt * dt)

    if n_bulk == 0:
        return tail_sse / jnp.float32(n)

    rows = n_bulk // _LANES             # always a multiple of 8
    if n_bulk != n:
        a_flat = a_flat[:n_bulk]
        b_flat = b_flat[:n_bulk]
    a2 = a_flat.reshape(rows, _LANES)
    b2 = b_flat.reshape(rows, _LANES)

    br = min(block_rows, rows)          # multiple of 8 either way
    num_blocks = (rows + br - 1) // br

    kernel = functools.partial(_sse_partial_kernel,
                               block_rows=br, total_rows=rows)

    partials = pl.pallas_call(
        kernel,
        out_shape=jax.ShapeDtypeStruct((num_blocks, _SUBLANES, _LANES),
                                       jnp.float32),
        grid_spec=pltpu.PrefetchScalarGridSpec(
            num_scalar_prefetch=0,
            grid=(num_blocks,),
            in_specs=[
                pl.BlockSpec((br, _LANES), lambda i: (i, 0)),
                pl.BlockSpec((br, _LANES), lambda i: (i, 0)),
            ],
            # Each grid step owns its own output block -> no accumulator,
            # grid axis can be "parallel" (megacore-friendly on v7x).
            out_specs=pl.BlockSpec((1, _SUBLANES, _LANES),
                                   lambda i: (i, 0, 0)),
        ),
        compiler_params=pltpu.CompilerParams(
            dimension_semantics=("parallel",),
            vmem_limit_bytes=32 * 1024 * 1024),
    )(a2, b2)

    sse = jnp.sum(partials) + tail_sse
    return sse / jnp.float32(n)


@jax.jit
def fug_losses_forward(sr, pan, ms, dsr, dpan):
    """JAX/Pallas equivalent of FUG_Losses.forward.

    sr is accepted for signature parity but (like in the PyTorch module)
    is not used in the returned losses.
    """
    del sr
    # TODO(synk): the two reductions are left as two pallas_calls; fusing them
    #             only saves launch overhead (irrelevant at realistic sizes).
    loss1 = _mse_pallas(dsr, ms)
    loss2 = _mse_pallas(dpan, pan)
    return loss1, loss2


if __name__ == "__main__":
    key = jax.random.PRNGKey(0)
    k_sr, k_pan, k_ms, k_dsr, k_dpan = jax.random.split(key, 5)

    # Pansharpening-style shapes (NCHW): small MS, 4x larger single-band PAN.
    B, C, H, W = 2, 4, 16, 16
    sr = jax.random.normal(k_sr, (B, C, 4 * H, 4 * W), dtype=jnp.float32)
    pan = jax.random.normal(k_pan, (B, 1, 4 * H, 4 * W), dtype=jnp.float32)
    ms = jax.random.normal(k_ms, (B, C, H, W), dtype=jnp.float32)
    dsr = jax.random.normal(k_dsr, (B, C, H, W), dtype=jnp.float32)
    dpan = jax.random.normal(k_dpan, (B, 1, 4 * H, 4 * W), dtype=jnp.float32)

    loss1, loss2 = fug_losses_forward(sr, pan, ms, dsr, dpan)
    jax.block_until_ready((loss1, loss2))

    # Pure-JAX reference check.
    ref1 = jnp.mean((dsr - ms) ** 2)
    ref2 = jnp.mean((dpan - pan) ** 2)
    assert jnp.allclose(loss1, ref1, rtol=1e-5, atol=1e-6), (loss1, ref1)
    assert jnp.allclose(loss2, ref2, rtol=1e-5, atol=1e-6), (loss2, ref2)

    # Extra check: odd size exercises multi-block grid, OOB-row masking, and
    # the ragged-tail path (n = 3120 -> 3072 bulk + 48 tail, 2 blocks of 16 rows).
    xo = jax.random.normal(jax.random.PRNGKey(1), (2, 3, 8, 65), dtype=jnp.float32)
    yo = jax.random.normal(jax.random.PRNGKey(2), (2, 3, 8, 65), dtype=jnp.float32)
    odd = _mse_pallas(xo, yo, block_rows=16)
    jax.block_until_ready(odd)
    refo = jnp.mean((xo - yo) ** 2)
    assert jnp.allclose(odd, refo, rtol=1e-5, atol=1e-6), (odd, refo)

    print("KERNEL_OK")
</pallas_src>

<mosaic_0001>
module attributes {stable_mosaic.version = 11 : i64} {
  func.func @_sse_partial_kernel(%arg0: i32, %arg1: memref<64x128xf32, #tpu.memory_space<vmem>>, %arg2: memref<64x128xf32, #tpu.memory_space<vmem>>, %arg3: memref<1x8x128xf32, #tpu.memory_space<vmem>>) attributes {dimension_semantics = [#tpu.dimension_semantics<parallel>], iteration_bounds = array<i64: 1>, scalar_prefetch = 0 : i64, scratch_operands = 0 : i64, tpu.core_type = #tpu.core_type<tc>, window_params = [{transform_indices = @transform_0, window_bounds = array<i64: 64, 128>}, {transform_indices = @transform_1, window_bounds = array<i64: 64, 128>}, {transform_indices = @transform_2, window_bounds = array<i64: 1, 8, 128>}]} {
    %c0 = arith.constant 0 : index
    %c0_0 = arith.constant 0 : index
    %0 = vector.load %arg1[%c0, %c0_0] : memref<64x128xf32, #tpu.memory_space<vmem>>, vector<64x128xf32>
    %c0_1 = arith.constant 0 : index
    %c0_2 = arith.constant 0 : index
    %1 = vector.load %arg2[%c0_1, %c0_2] : memref<64x128xf32, #tpu.memory_space<vmem>>, vector<64x128xf32>
    %2 = arith.subf %0, %1 : vector<64x128xf32>
    %3 = arith.mulf %2, %2 : vector<64x128xf32>
    %4 = vector.shape_cast %3 : vector<64x128xf32> to vector<8x8x128xf32>
    %cst = arith.constant dense<0.000000e+00> : vector<8x128xf32>
    %5 = vector.multi_reduction <add>, %4, %cst [0] : vector<8x8x128xf32> to vector<8x128xf32>
    %6 = vector.shape_cast %5 : vector<8x128xf32> to vector<1x8x128xf32>
    %c0_3 = arith.constant 0 : index
    %c0_4 = arith.constant 0 : index
    %c0_5 = arith.constant 0 : index
    %7 = vector.load %arg3[%c0_3, %c0_4, %c0_5] : memref<1x8x128xf32, #tpu.memory_space<vmem>>, vector<1x8x128xf32>
    tpu.vector_store %arg3[%c0_3, %c0_4, %c0_5], %6 {strides = array<i32>} : memref<1x8x128xf32, #tpu.memory_space<vmem>>, vector<1x8x128xf32>,
    return
  }
  func.func @transform_0(%arg0: i32) -> (i32, i32) {
    %c0_i32 = arith.constant 0 : i32
    %c0_i32_0 = arith.constant 0 : i32
    return %arg0, %c0_i32 : i32, i32
  }
  func.func @transform_1(%arg0: i32) -> (i32, i32) {
    %c0_i32 = arith.constant 0 : i32
    %c0_i32_0 = arith.constant 0 : i32
    return %arg0, %c0_i32 : i32, i32
  }
  func.func @transform_2(%arg0: i32) -> (i32, i32, i32) {
    %c0_i32 = arith.constant 0 : i32
    %c0_i32_0 = arith.constant 0 : i32
    %c0_i32_1 = arith.constant 0 : i32
    return %arg0, %c0_i32, %c0_i32_0 : i32, i32, i32
  }
}

module attributes {stable_mosaic.version = 11 : i64} {
  func.func @_sse_partial_kernel(%arg0: i32, %arg1: memref<16x128xf32, #tpu.memory_space<vmem>>, %arg2: memref<16x128xf32, #tpu.memory_space<vmem>>, %arg3: memref<1x8x128xf32, #tpu.memory_space<vmem>>) attributes {dimension_semantics = [#tpu.dimension_semantics<parallel>], iteration_bounds = array<i64: 1>, scalar_prefetch = 0 : i64, scratch_operands = 0 : i64, tpu.core_type = #tpu.core_type<tc>, window_params = [{transform_indices = @transform_0, window_bounds = array<i64: 16, 128>}, {transform_indices = @transform_1, window_bounds = array<i64: 16, 128>}, {transform_indices = @transform_2, window_bounds = array<i64: 1, 8, 128>}]} {
    %c0 = arith.constant 0 : index
    %c0_0 = arith.constant 0 : index
    %0 = vector.load %arg1[%c0, %c0_0] : memref<16x128xf32, #tpu.memory_space<vmem>>, vector<16x128xf32>
    %c0_1 = arith.constant 0 : index
    %c0_2 = arith.constant 0 : index
    %1 = vector.load %arg2[%c0_1, %c0_2] : memref<16x128xf32, #tpu.memory_space<vmem>>, vector<16x128xf32>
    %2 = arith.subf %0, %1 : vector<16x128xf32>
    %3 = arith.mulf %2, %2 : vector<16x128xf32>
    %4 = vector.shape_cast %3 : vector<16x128xf32> to vector<2x8x128xf32>
    %cst = arith.constant dense<0.000000e+00> : vector<8x128xf32>
    %5 = vector.multi_reduction <add>, %4, %cst [0] : vector<2x8x128xf32> to vector<8x128xf32>
    %6 = vector.shape_cast %5 : vector<8x128xf32> to vector<1x8x128xf32>
    %c0_3 = arith.constant 0 : index
    %c0_4 = arith.constant 0 : index
    %c0_5 = arith.constant 0 : index
    %7 = vector.load %arg3[%c0_3, %c0_4, %c0_5] : memref<1x8x128xf32, #tpu.memory_space<vmem>>, vector<1x8x128xf32>
    tpu.vector_store %arg3[%c0_3, %c0_4, %c0_5], %6 {strides = array<i32>} : memref<1x8x128xf32, #tpu.memory_space<vmem>>, vector<1x8x128xf32>,
    return
  }
  func.func @transform_0(%arg0: i32) -> (i32, i32) {
    %c0_i32 = arith.constant 0 : i32
    %c0_i32_0 = arith.constant 0 : i32
    return %arg0, %c0_i32 : i32, i32
  }
  func.func @transform_1(%arg0: i32) -> (i32, i32) {
    %c0_i32 = arith.constant 0 : i32
    %c0_i32_0 = arith.constant 0 : i32
    return %arg0, %c0_i32 : i32, i32
  }
  func.func @transform_2(%arg0: i32) -> (i32, i32, i32) {
    %c0_i32 = arith.constant 0 : i32
    %c0_i32_0 = arith.constant 0 : i32
    %c0_i32_1 = arith.constant 0 : i32
    return %arg0, %c0_i32, %c0_i32_0 : i32, i32, i32
  }
}

</mosaic_0001>

<bundles_post_ra>
// kernel: fug_losses_forward.3
= control target key start
LH: loop header
LB: loop body
LE: loop exit
PB: predicated region body
PF: predicated region fallthrough
CT: control target
= control target key end

     0   :  { %s121_s0 = inlined_call_operand.vmem [shape: f32[64,128], index: 0, kind: input, shape index: {}]   ;;  %s122_s1 = inlined_call_operand.vmem [shape: f32[64,128], index: 1, kind: input, shape index: {}]   ;;  %s123_s2 = inlined_call_operand.vmem [shape: f32[1,8,128], index: 2, kind: output, shape index: {}]  }
   0x1   :  { %v11_v0 = vld [vmem:[%s121_s0] sm:$0xff]  ;;  %v12_v1 = vld [vmem:[%s121_s0 + $0x8] sm:$0xff]  ;;  %v13_v2 = vld [vmem:[%s121_s0 + $0x10] sm:$0xff] }
   0x2   :  { %v14_v3 = vld [vmem:[%s121_s0 + $0x18] sm:$0xff]  ;;  %v15_v4 = vld [vmem:[%s121_s0 + $0x20] sm:$0xff]  ;;  %v20_v6 = vld [vmem:[%s122_s1 + $0x8] sm:$0xff] }
   0x3   :  { %v19_v5 = vld [vmem:[%s122_s1] sm:$0xff]  ;;  %v21_v7 = vld [vmem:[%s122_s1 + $0x10] sm:$0xff]  ;;  %v22_v8 = vld [vmem:[%s122_s1 + $0x18] sm:$0xff]  ;;  %v28_v11 = vsub.f32 %v12_v1, %v20_v6 }
   0x4   :  { %v27_v9 = vsub.f32 %v11_v0, %v19_v5  ;;  %v23_v10 = vld [vmem:[%s122_s1 + $0x20] sm:$0xff]  ;;  %v29_v12 = vsub.f32 %v13_v2, %v21_v7  ;;  %v30_v13 = vsub.f32 %v14_v3, %v22_v8  ;;  %v16_v14 = vld [vmem:[%s121_s0 + $0x28] sm:$0xff]  ;;  %v17_v20 = vld [vmem:[%s121_s0 + $0x30] sm:$0xff] }
   0x5   :  { %v24_v15 = vld [vmem:[%s122_s1 + $0x28] sm:$0xff]  ;;  %v31_v17 = vsub.f32 %v15_v4, %v23_v10  ;;  %v36_v18 = vmul.f32 %v28_v11, %v28_v11  ;;  %v25_v21 = vld [vmem:[%s122_s1 + $0x30] sm:$0xff]  ;;  %v18_v25 = vld [vmem:[%s121_s0 + $0x38] sm:$0xff] }
   0x6   :  { %v35_v16 = vmul.f32 %v27_v9, %v27_v9  ;;  %v37_v19 = vmul.f32 %v29_v12, %v29_v12  ;;  %v32_v22 = vsub.f32 %v16_v14, %v24_v15  ;;  %v38_v23 = vmul.f32 %v30_v13, %v30_v13  ;;  %v26_v26 = vld [vmem:[%s122_s1 + $0x38] sm:$0xff] }
   0x7   :  { %v33_v27 = vsub.f32 %v17_v20, %v25_v21  ;;  %v39_v28 = vmul.f32 %v31_v17, %v31_v17  ;;  %v34_v30 = vsub.f32 %v18_v25, %v26_v26 }
   0x8   :  { %v43_v24 = vadd.f32 %v36_v18, %v35_v16  ;;  %v40_v31 = vmul.f32 %v32_v22, %v32_v22 }
   0x9   :  { %v41_v33 = vmul.f32 %v33_v27, %v33_v27  ;;  %v42_v35 = vmul.f32 %v34_v30, %v34_v30 }
   0xa   :  { %v44_v29 = vadd.f32 %v43_v24, %v37_v19 }
   0xc   :  { %v45_v32 = vadd.f32 %v44_v29, %v38_v23 }
   0xe   :  { %v46_v34 = vadd.f32 %v45_v32, %v39_v28 }
  0x10   :  { %v47_v36 = vadd.f32 %v46_v34, %v40_v31 }
  0x12   :  { %v48_v37 = vadd.f32 %v47_v36, %v41_v33 }
  0x14   :  { %v49_v38 = vadd.f32 %v48_v37, %v42_v35 }
  0x16   :  { %50 = vst [vmem:[%s123_s2] sm:$0xff] %v49_v38 }

// kernel: fug_losses_forward.2
= control target key start
LH: loop header
LB: loop body
LE: loop exit
PB: predicated region body
PF: predicated region fallthrough
CT: control target
= control target key end

     0   :  { %s55_s0 = inlined_call_operand.vmem [shape: f32[16,128], index: 0, kind: input, shape index: {}]   ;;  %s56_s1 = inlined_call_operand.vmem [shape: f32[16,128], index: 1, kind: input, shape index: {}]   ;;  %s57_s2 = inlined_call_operand.vmem [shape: f32[1,8,128], index: 2, kind: output, shape index: {}]  }
   0x1   :  { %v11_v0 = vld [vmem:[%s55_s0] sm:$0xff]  ;;  %v12_v1 = vld [vmem:[%s55_s0 + $0x8] sm:$0xff] }
   0x2   :  { %v13_v2 = vld [vmem:[%s56_s1] sm:$0xff]  ;;  %v14_v3 = vld [vmem:[%s56_s1 + $0x8] sm:$0xff] }
   0x3   :  { %v15_v4 = vsub.f32 %v11_v0, %v13_v2  ;;  %v16_v5 = vsub.f32 %v12_v1, %v14_v3 }
   0x5   :  { %v17_v6 = vmul.f32 %v15_v4, %v15_v4  ;;  %v18_v7 = vmul.f32 %v16_v5, %v16_v5 }
   0x7   :  { %v19_v8 = vadd.f32 %v18_v7, %v17_v6 }
   0x9   :  { %20 = vst [vmem:[%s57_s2] sm:$0xff] %v19_v8 }

</bundles_post_ra>
